<compile_context>
chip_gen: v7x
topology: tpu7x:2x2x1
jax: 0.10.0
libtpu: 0.0.40
codegen_flags: <defaults>
</compile_context>

<pallas_src>
import functools

import numpy as np
import jax
import jax.numpy as jnp
from jax.experimental import pallas as pl
from jax.experimental.pallas import tpu as pltpu


# ----------------------------------------------------------------------------
# tiling / budget helpers
# ----------------------------------------------------------------------------
def _round_up(v, m):
    return ((v + m - 1) // m) * m


def _choose_div_tile(n, align, cap):
    """Largest divisor of n that is a multiple of `align` and <= cap, else n (full dim).
    Keeps BlockSpec last-two-dims legality (multiple of align, or the full dimension)."""
    if n <= cap:
        return n
    best = None
    t = align
    while t <= cap:
        if n % t == 0:
            best = t
        t += align
    return best if best is not None else n


def _choose_s_tile(s, t, block_bytes):
    """Largest S-tile such that an f32 [ts, T] conf block stays near `block_bytes`.
    Prefers 128-aligned divisors (enables lane-dense rowsum stores); 8-aligned fallback."""
    cap = max(128, block_bytes // (4 * max(t, 1)))
    if s <= cap:
        return s
    for align in (128, 8):
        best = None
        tile = align
        while tile <= cap:
            if s % tile == 0:
                best = tile
            tile += align
        if best is not None:
            return best
    return s


def _device_budgets():
    """(conf-block byte target, scoped-VMEM limit) per TPU generation.
    v5e/v6e have 128 MiB physical VMEM -> large tiles; v7x (64 MiB) / unknown -> conservative."""
    kind = ""
    try:
        kind = jax.devices()[0].device_kind.lower()
    except Exception:
        pass
    if ("v5" in kind) or ("v6" in kind):
        return 8 * 1024 * 1024, 100 * 1024 * 1024
    return 2 * 1024 * 1024, 48 * 1024 * 1024


# ----------------------------------------------------------------------------
# fused pointwise MLP (encoder stand-in -> bottleneck -> decoder stand-in) + vis head
# ----------------------------------------------------------------------------
def _mlp3_vis_kernel(x_ref, w1_ref, b1_ref, w2_ref, b2_ref, w3_ref, b3_ref,
                     wv_ref, bv_ref, feat_ref, vis_ref):
    h = jnp.dot(x_ref[...], w1_ref[...], preferred_element_type=jnp.float32) + b1_ref[...]
    h = jnp.dot(h.astype(jnp.bfloat16), w2_ref[...],
                preferred_element_type=jnp.float32) + b2_ref[...]
    h = jnp.dot(h.astype(jnp.bfloat16), w3_ref[...],
                preferred_element_type=jnp.float32) + b3_ref[...]
    hb = h.astype(jnp.bfloat16)
    feat_ref[...] = hb                                       # bf16 feats: half the writeback
    # visibility head fused in (tiny M=1 dot on the already-resident tile) -> lane-dense [1, tn]
    v = jax.lax.dot_general(wv_ref[...], hb, (((1,), (1,)), ((), ())),
                            preferred_element_type=jnp.float32) + bv_ref[...]
    vis_ref[...] = jnp.clip(jax.nn.sigmoid(v), 0.0, 1.0)


def fused_pointwise_mlp3_vis(x, w1, b1, w2, b2, w3, b3, wv, bv):
    """Three chained per-point linear layers (Conv1d k=1) + visibility projection,
    fused into one row-tiled kernel.  Returns (feats bf16 [N, Cpad], vis f32 [N])."""
    n, cin = x.shape
    cout = w3.shape[1]
    tn = _choose_div_tile(n, 128, 2048)
    f32, bf16 = jnp.float32, jnp.bfloat16
    feat, vis = pl.pallas_call(
        _mlp3_vis_kernel,
        out_shape=(jax.ShapeDtypeStruct((n, cout), bf16),
                   jax.ShapeDtypeStruct((1, n), f32)),
        grid=(n // tn,),
        in_specs=[pl.BlockSpec((tn, cin), lambda i: (i, 0)),
                  pl.BlockSpec(w1.shape, lambda i: (0, 0)),
                  pl.BlockSpec((1, w1.shape[1]), lambda i: (0, 0)),
                  pl.BlockSpec(w2.shape, lambda i: (0, 0)),
                  pl.BlockSpec((1, w2.shape[1]), lambda i: (0, 0)),
                  pl.BlockSpec(w3.shape, lambda i: (0, 0)),
                  pl.BlockSpec((1, w3.shape[1]), lambda i: (0, 0)),
                  pl.BlockSpec((1, w3.shape[1]), lambda i: (0, 0)),
                  pl.BlockSpec((1, 1), lambda i: (0, 0))],
        out_specs=(pl.BlockSpec((tn, cout), lambda i: (i, 0)),
                   pl.BlockSpec((1, tn), lambda i: (0, i))),
        compiler_params=pltpu.CompilerParams(dimension_semantics=("parallel",)),
    )(x.astype(bf16),
      w1.astype(bf16), b1.reshape(1, -1).astype(f32),
      w2.astype(bf16), b2.reshape(1, -1).astype(f32),
      w3.astype(bf16), b3.reshape(1, -1).astype(f32),
      wv.reshape(1, -1).astype(bf16), bv.reshape(1, 1).astype(f32))
    return feat, vis[0]


# ----------------------------------------------------------------------------
# matching: two-pass tiled dual softmax (feature similarity + confidence)
# pass A: per-row raw sim sums + per-row log-sum-exp + online per-column max/sum-exp
# pass B: conf = exp((sc - row_lse) + (sc - col_lse))  -- single exp, no divides
# ----------------------------------------------------------------------------
def _match_stats_kernel(src_ref, tgt_ref, rowsum_ref, rlse_ref, cmax_ref, csum_ref,
                        *, inv_temp, lane_rowsum):
    si = pl.program_id(2)

    @pl.when(si == 0)
    def _():
        cmax_ref[...] = jnp.full_like(cmax_ref, -jnp.inf)
        csum_ref[...] = jnp.zeros_like(csum_ref)

    sim = jax.lax.dot_general(src_ref[0], tgt_ref[0], (((1,), (1,)), ((), ())),
                              preferred_element_type=jnp.float32)          # [Ts, T]
    if lane_rowsum:
        # lane-dense [1, Ts] row-sum (sum of dots == ones-row matmul; avoids a transpose)
        ones_row = jnp.ones((1, sim.shape[1]), jnp.float32)
        rowsum_ref[0] = jax.lax.dot_general(ones_row, sim, (((1,), (1,)), ((), ())),
                                            preferred_element_type=jnp.float32)
    else:
        rowsum_ref[0] = jnp.sum(sim, axis=1, keepdims=True)                # [Ts, 1]

    sc = sim * inv_temp
    # exact per-row log-sum-exp (full T resident in this tile)
    rmax = jnp.max(sc, axis=1, keepdims=True)                              # [Ts, 1]
    rsum = jnp.sum(jnp.exp(sc - rmax), axis=1, keepdims=True)
    rlse_ref[0] = rmax + jnp.log(rsum)
    # online per-column max / sum-exp over all of S
    m_old = cmax_ref[0]                                                    # [1, T]
    m_new = jnp.maximum(m_old, jnp.max(sc, axis=0, keepdims=True))
    csum_ref[0] = (csum_ref[0] * jnp.exp(m_old - m_new)
                   + jnp.sum(jnp.exp(sc - m_new), axis=0, keepdims=True))
    cmax_ref[0] = m_new


def _match_conf_kernel(src_ref, tgt_ref, rlse_ref, cmax_ref, csum_ref, conf_ref, *, inv_temp):
    sim = jax.lax.dot_general(src_ref[0], tgt_ref[0], (((1,), (1,)), ((), ())),
                              preferred_element_type=jnp.float32)          # [Ts, T]
    sc = sim * inv_temp
    clse = cmax_ref[0] + jnp.log(csum_ref[0])                              # [1, T]
    # row_softmax * col_softmax collapsed into one exp (arguments are <= 0: no overflow)
    conf = jnp.exp((sc - rlse_ref[0]) + (sc - clse))
    conf_ref[0] = conf.astype(conf_ref.dtype)


def matching_pallas(src_feats, tgt_feats, temperature=0.1):
    """Dual-softmax matching.
    src_feats: [B, S, C]; tgt_feats: [Bt, T, C] with Bt in {1, B} (Bt=1 => shared target).
    Returns (conf [B, S, T] bf16, sim_row_sum [B, S] f32)."""
    b, s, c = src_feats.shape
    bt, t, _ = tgt_feats.shape
    assert bt in (1, b)
    src = src_feats.astype(jnp.bfloat16)
    tgt = tgt_feats.astype(jnp.bfloat16)
    conf_target, vmem_limit = _device_budgets()
    ts = _choose_s_tile(s, t, conf_target)
    n_s = s // ts
    lane_rowsum = (ts % 128 == 0) or (ts == s)
    inv_temp = 1.0 / float(temperature)

    # v7x megacore: when the global match has b == 1, split S across two halves on a
    # leading 'parallel' axis; column stats are merged exactly below.  Harmless elsewhere.
    n_half = 2 if (b == 1 and n_s % 2 == 0 and n_s >= 4) else 1
    nsh = n_s // n_half

    if bt == 1:
        tgt_map_a = lambda h, bi, si: (0, 0, 0)
        tgt_map_b = lambda si, bi: (0, 0, 0)
    else:
        tgt_map_a = lambda h, bi, si: (bi, 0, 0)
        tgt_map_b = lambda si, bi: (bi, 0, 0)

    if lane_rowsum:
        rowsum_shape = (b, 1, s)
        rowsum_spec = pl.BlockSpec((1, 1, ts), lambda h, bi, si: (bi, 0, h * nsh + si))
    else:
        rowsum_shape = (b, s, 1)
        rowsum_spec = pl.BlockSpec((1, ts, 1), lambda h, bi, si: (bi, h * nsh + si, 0))

    # ----- pass A: row sums + row LSE + per-column online max / sum-exp -----
    rowsum, rlse, cmax, csum = pl.pallas_call(
        functools.partial(_match_stats_kernel, inv_temp=inv_temp, lane_rowsum=lane_rowsum),
        out_shape=(jax.ShapeDtypeStruct(rowsum_shape, jnp.float32),
                   jax.ShapeDtypeStruct((b, s, 1), jnp.float32),
                   jax.ShapeDtypeStruct((b * n_half, 1, t), jnp.float32),
                   jax.ShapeDtypeStruct((b * n_half, 1, t), jnp.float32)),
        grid=(n_half, b, nsh),
        in_specs=[pl.BlockSpec((1, ts, c), lambda h, bi, si: (bi, h * nsh + si, 0)),
                  pl.BlockSpec((1, t, c), tgt_map_a)],
        out_specs=(rowsum_spec,
                   pl.BlockSpec((1, ts, 1), lambda h, bi, si: (bi, h * nsh + si, 0)),
                   pl.BlockSpec((1, 1, t), lambda h, bi, si: (bi * n_half + h, 0, 0)),
                   pl.BlockSpec((1, 1, t), lambda h, bi, si: (bi * n_half + h, 0, 0))),
        compiler_params=pltpu.CompilerParams(
            dimension_semantics=("parallel", "parallel", "arbitrary"),
            vmem_limit_bytes=vmem_limit),
    )(src, tgt)

    # exact log-sum-exp merge of the per-half column stats (no-op when n_half == 1)
    cmax_r = cmax.reshape(b, n_half, t)
    csum_r = csum.reshape(b, n_half, t)
    cmax_m = jnp.max(cmax_r, axis=1, keepdims=True)                        # [b, 1, t]
    csum_m = jnp.sum(csum_r * jnp.exp(cmax_r - cmax_m), axis=1, keepdims=True)

    # ----- pass B: conf (bf16) = exp((sc - row_lse) + (sc - col_lse)), single exp -----
    conf = pl.pallas_call(
        functools.partial(_match_conf_kernel, inv_temp=inv_temp),
        out_shape=jax.ShapeDtypeStruct((b, s, t), jnp.bfloat16),
        grid=(n_s, b),
        in_specs=[pl.BlockSpec((1, ts, c), lambda si, bi: (bi, si, 0)),
                  pl.BlockSpec((1, t, c), tgt_map_b),
                  pl.BlockSpec((1, ts, 1), lambda si, bi: (bi, si, 0)),
                  pl.BlockSpec((1, 1, t), lambda si, bi: (bi, 0, 0)),
                  pl.BlockSpec((1, 1, t), lambda si, bi: (bi, 0, 0))],
        out_specs=pl.BlockSpec((1, ts, t), lambda si, bi: (bi, si, 0)),
        compiler_params=pltpu.CompilerParams(
            dimension_semantics=("parallel", "parallel"),
            vmem_limit_bytes=vmem_limit),
    )(src, tgt, rlse, cmax_m, csum_m)

    sim_rowsum = rowsum[:, 0, :] if lane_rowsum else rowsum[:, :, 0]
    return conf, sim_rowsum


# ----------------------------------------------------------------------------
# node-to-point squared distances (lane-dense [K, N] output, VPU formulation)
# ----------------------------------------------------------------------------
def _node_sqdist_kernel(node_ref, srcT_ref, o_ref):
    node = node_ref[...]                                   # [K, 3]
    srcT = srcT_ref[...]                                   # [3, N]
    d0 = node[:, 0:1] - srcT[0:1, :]
    d1 = node[:, 1:2] - srcT[1:2, :]
    d2 = node[:, 2:3] - srcT[2:3, :]
    o_ref[...] = d0 * d0 + d1 * d1 + d2 * d2


def node_point_sqdist(nodes, src_pcd):
    nodes = jnp.asarray(nodes, jnp.float32)                # [K, 3]
    srcT = jnp.asarray(src_pcd, jnp.float32).T             # [3, N]
    return pl.pallas_call(
        _node_sqdist_kernel,
        out_shape=jax.ShapeDtypeStruct((nodes.shape[0], srcT.shape[1]), jnp.float32),
    )(nodes, srcT)


# ----------------------------------------------------------------------------
# batched weighted Procrustes (covariance reduction in Pallas, 3x3 SVD in JAX)
# [3, N] layout: coords on sublanes, points on lanes -> full-width VPU math
# ----------------------------------------------------------------------------
def _procrustes_stats_kernel(src_ref, ref_ref, w_ref, h_ref, sc_ref, rc_ref,
                             *, eps, weight_thresh):
    w = w_ref[0]                                           # [1, N]
    w = jnp.where(w < weight_thresh, jnp.zeros_like(w), w)
    w = w / (jnp.sum(w, axis=1, keepdims=True) + eps)
    src = src_ref[0]                                       # [3, N]
    ref = ref_ref[0]                                       # [3, N]
    sc = jnp.sum(src * w, axis=1, keepdims=True)           # [3, 1]
    rc = jnp.sum(ref * w, axis=1, keepdims=True)           # [3, 1]
    src_c = src - sc
    ref_c = ref - rc
    h_ref[0] = jax.lax.dot_general(src_c, ref_c * w, (((1,), (1,)), ((), ())),
                                   preferred_element_type=jnp.float32)     # [3, 3]
    sc_ref[0] = sc
    rc_ref[0] = rc


def batched_weighted_procrustes(src_pts_t, ref_pts_t, weights, weight_thresh=0.0, eps=1e-5):
    """src/ref: [K, 3, N] (coords x points); weights: [K, N] (zero-padded columns ignored).
    Returns R: [K, 3, 3], t: [K, 3]."""
    k, _, n = src_pts_t.shape
    kern = functools.partial(_procrustes_stats_kernel, eps=eps, weight_thresh=weight_thresh)
    H, sc, rc = pl.pallas_call(
        kern,
        out_shape=(jax.ShapeDtypeStruct((k, 3, 3), jnp.float32),
                   jax.ShapeDtypeStruct((k, 3, 1), jnp.float32),
                   jax.ShapeDtypeStruct((k, 3, 1), jnp.float32)),
        grid=(k,),
        in_specs=[pl.BlockSpec((1, 3, n), lambda i: (i, 0, 0)),
                  pl.BlockSpec((1, 3, n), lambda i: (i, 0, 0)),
                  pl.BlockSpec((1, 1, n), lambda i: (i, 0, 0))],
        out_specs=(pl.BlockSpec((1, 3, 3), lambda i: (i, 0, 0)),
                   pl.BlockSpec((1, 3, 1), lambda i: (i, 0, 0)),
                   pl.BlockSpec((1, 3, 1), lambda i: (i, 0, 0))),
        compiler_params=pltpu.CompilerParams(dimension_semantics=("parallel",)),
    )(src_pts_t.astype(jnp.float32), ref_pts_t.astype(jnp.float32),
      weights.astype(jnp.float32)[:, None, :])
    # TODO(synk): torch.svd has no Pallas equivalent; the tiny batched 3x3 SVD stays in JAX.
    U, _, Vh = jnp.linalg.svd(H)
    V = jnp.swapaxes(Vh, -1, -2)
    Ut = jnp.swapaxes(U, -1, -2)
    sign = jnp.sign(jnp.linalg.det(V @ Ut))                                # [K]
    diag = jnp.stack([jnp.ones_like(sign), jnp.ones_like(sign), sign], axis=-1)
    E = jnp.eye(3, dtype=jnp.float32)[None, :, :] * diag[:, None, :]
    R = V @ E @ Ut
    t = rc[:, :, 0] - jnp.einsum("kij,kj->ki", R, sc[:, :, 0])
    return R, t


# ----------------------------------------------------------------------------
# batched chamfer residual: mean over tgt of min over warped-src squared distance
# warp hoisted to XLA; src axis tiled with a running-min scratch (no [Tt, Ns] monolith)
# ----------------------------------------------------------------------------
def _cp_res_kernel(ws_ref, tgt_ref, out_ref, minbuf):
    ti = pl.program_id(1)
    si = pl.program_id(2)

    @pl.when(jnp.logical_and(ti == 0, si == 0))
    def _():
        out_ref[...] = jnp.zeros_like(out_ref)

    @pl.when(si == 0)
    def _():
        minbuf[...] = jnp.full_like(minbuf, jnp.inf)

    ws = ws_ref[0]                                          # [3, tsrc] (already warped)
    tgt = tgt_ref[...]                                      # [tt, 3]
    d0 = tgt[:, 0:1] - ws[0:1, :]
    d1 = tgt[:, 1:2] - ws[1:2, :]
    d2 = tgt[:, 2:3] - ws[2:3, :]
    dist = d0 * d0 + d1 * d1 + d2 * d2                      # [tt, tsrc]
    minbuf[...] = jnp.minimum(minbuf[...], jnp.min(dist, axis=1, keepdims=True))

    @pl.when(si == pl.num_programs(2) - 1)
    def _():
        out_ref[0] = out_ref[0] + jnp.sum(minbuf[...], axis=0, keepdims=True)


def chamfer_cp_res(src_pcd, tgt_pcd, R_all, t_all):
    """For each transform k: mean_j min_i ||tgt_j - (R_k src_i + t_k)||^2.  Returns [K]."""
    k = R_all.shape[0]
    srcT = jnp.asarray(src_pcd, jnp.float32).T              # [3, Ns]
    tgt = jnp.asarray(tgt_pcd, jnp.float32)                 # [Nt, 3]
    ns = srcT.shape[1]
    nt = tgt.shape[0]
    # warp only depends on k: hoist out of the tiled loop (tiny einsum, [K, 3, Ns])
    warped = (jnp.einsum("kij,jn->kin", R_all.astype(jnp.float32), srcT)
              + t_all.astype(jnp.float32)[:, :, None])
    tt = _choose_div_tile(nt, 8, 512)
    tsrc = _choose_div_tile(ns, 128, 1024)
    cp_sum = pl.pallas_call(
        _cp_res_kernel,
        out_shape=jax.ShapeDtypeStruct((k, 1, 1), jnp.float32),
        grid=(k, nt // tt, ns // tsrc),
        in_specs=[pl.BlockSpec((1, 3, tsrc), lambda ki, ti, si: (ki, 0, si)),
                  pl.BlockSpec((tt, 3), lambda ki, ti, si: (ti, 0))],
        out_specs=pl.BlockSpec((1, 1, 1), lambda ki, ti, si: (ki, 0, 0)),
        scratch_shapes=[pltpu.VMEM((tt, 1), jnp.float32)],
        compiler_params=pltpu.CompilerParams(
            dimension_semantics=("parallel", "arbitrary", "arbitrary")),
    )(warped, tgt)
    return cp_sum[:, 0, 0] / jnp.float32(nt)


# ----------------------------------------------------------------------------
# batched per-cluster residual stats (masked mean residual + inlier count), [3, N] layout
# ----------------------------------------------------------------------------
def _cluster_res_kernel(src_ref, tgt_ref, m_ref, r_ref, t_ref, mean_ref, inl_ref):
    warped = jnp.dot(r_ref[0], src_ref[0], preferred_element_type=jnp.float32) + t_ref[0]
    d = tgt_ref[0] - warped                                 # [3, N]
    res = jnp.sqrt(jnp.maximum(jnp.sum(d * d, axis=0, keepdims=True), 0.0))   # [1, N]
    m = m_ref[0]                                            # [1, N]
    cnt = jnp.sum(m, axis=1, keepdims=True)
    mean_ref[0] = jnp.sum(res * m, axis=1, keepdims=True) / jnp.maximum(cnt, 1.0)
    inl_ref[0] = jnp.sum(jnp.where(res < 0.05, m, jnp.zeros_like(m)), axis=1, keepdims=True)


def cluster_residual_stats(src_t, tgt_t, mask, R_cl, t_cl):
    """src_t/tgt_t: [K, 3, N]; mask: [K, N]; R_cl: [K, 3, 3]; t_cl: [K, 3]."""
    k, _, n = src_t.shape
    mean, inlier = pl.pallas_call(
        _cluster_res_kernel,
        out_shape=(jax.ShapeDtypeStruct((k, 1, 1), jnp.float32),
                   jax.ShapeDtypeStruct((k, 1, 1), jnp.float32)),
        grid=(k,),
        in_specs=[pl.BlockSpec((1, 3, n), lambda i: (i, 0, 0)),
                  pl.BlockSpec((1, 3, n), lambda i: (i, 0, 0)),
                  pl.BlockSpec((1, 1, n), lambda i: (i, 0, 0)),
                  pl.BlockSpec((1, 3, 3), lambda i: (i, 0, 0)),
                  pl.BlockSpec((1, 3, 1), lambda i: (i, 0, 0))],
        out_specs=(pl.BlockSpec((1, 1, 1), lambda i: (i, 0, 0)),
                   pl.BlockSpec((1, 1, 1), lambda i: (i, 0, 0))),
        compiler_params=pltpu.CompilerParams(dimension_semantics=("parallel",)),
    )(src_t.astype(jnp.float32), tgt_t.astype(jnp.float32),
      mask.astype(jnp.float32)[:, None, :],
      R_cl.astype(jnp.float32), t_cl.reshape(k, 3, 1).astype(jnp.float32))
    return mean[:, 0, 0], inlier[:, 0, 0]


# ----------------------------------------------------------------------------
# per-point residuals under one transform (lane-dense [1, M] output)
# ----------------------------------------------------------------------------
def _point_res_kernel(srcT_ref, tgtT_ref, r_ref, t_ref, o_ref):
    wsT = jnp.dot(r_ref[...], srcT_ref[...], preferred_element_type=jnp.float32) + t_ref[...]
    d = tgtT_ref[...] - wsT
    o_ref[...] = jnp.sqrt(jnp.maximum(jnp.sum(d * d, axis=0, keepdims=True), 0.0))


def point_residuals(src_sel, tgt_sel, R, t):
    srcT = jnp.asarray(src_sel, jnp.float32).T               # [3, M]
    tgtT = jnp.asarray(tgt_sel, jnp.float32).T
    res = pl.pallas_call(
        _point_res_kernel,
        out_shape=jax.ShapeDtypeStruct((1, srcT.shape[1]), jnp.float32),
    )(srcT, tgtT, jnp.asarray(R, jnp.float32), jnp.asarray(t, jnp.float32).reshape(3, 1))
    return res[0]


# ----------------------------------------------------------------------------
# host-side glue (data-dependent control flow, mirroring eager PyTorch)
# ----------------------------------------------------------------------------
def extract_matches(conf_np):
    """Mutual nearest-neighbour matches -> (b, i, j) rows (vectorized per batch)."""
    conf_np = np.asarray(conf_np)
    s = conf_np.shape[1]
    out = []
    for b in range(conf_np.shape[0]):
        c = conf_np[b]
        row_arg = c.argmax(axis=1)
        col_arg = c.argmax(axis=0)
        mutual = col_arg[row_arg] == np.arange(s)
        i_idx = np.nonzero(mutual)[0]
        if i_idx.size:
            out.append(np.stack([np.full_like(i_idx, b), i_idx, row_arg[i_idx]], axis=1))
    if not out:
        return np.zeros((0, 3), dtype=np.int64)
    return np.concatenate(out, axis=0).astype(np.int64)


def furthest_point_sample_np(pts, k):
    # TODO(synk): pointnet2_utils.furthest_point_sample is a CUDA op; replicated on host.
    pts = np.asarray(pts)
    n = pts.shape[0]
    idx = np.zeros(k, dtype=np.int64)
    dist = np.full(n, np.inf)
    cur = 0
    for i in range(k):
        idx[i] = cur
        d = np.sum((pts - pts[cur]) ** 2, axis=1)
        dist = np.minimum(dist, d)
        cur = int(np.argmax(dist))
    return idx


def generate_node_clusters(src_pcd, src_node, point_limit):
    # TODO(synk): exact cluster-generation semantics unavailable; stand-in picks the
    # point_limit nearest source points per node (distances in Pallas, argpartition on host).
    d = np.asarray(node_point_sqdist(src_node, src_pcd))      # [K, N]
    n = d.shape[1]
    if point_limit >= n:
        idx = np.broadcast_to(np.arange(n), d.shape).copy()
    else:
        idx = np.argpartition(d, point_limit - 1, axis=1)[:, :point_limit]
    return jnp.asarray(idx.astype(np.int32))


# ----------------------------------------------------------------------------
# Model
# ----------------------------------------------------------------------------
def _init_linear_padded(key, cin, cout, cin_pad, cout_pad):
    kw, kb = jax.random.split(key)
    scale = 1.0 / np.sqrt(cin)
    w = jax.random.uniform(kw, (cin, cout), jnp.float32, -scale, scale)
    b = jax.random.uniform(kb, (cout,), jnp.float32, -scale, scale)
    wp = jnp.zeros((cin_pad, cout_pad), jnp.float32).at[:cin, :cout].set(w)
    bp = jnp.zeros((cout_pad,), jnp.float32).at[:cout].set(b)
    return wp, bp


class KPFCNNPallas:
    """Pallas re-implementation of KPFCNN.forward (inference path)."""

    def __init__(self, key, config, K=5):
        self.k = K
        keys = jax.random.split(key, 5)
        in_dim = config["in_feats_dim"]
        enc_dim = config["enc_dim"]
        feature_dim = config["feature_dim"]
        feature_dim_m = config["feature_dim_m"]
        self.c_out = feature_dim_m
        # hidden / output channel dims zero-padded to multiples of 128: identical math,
        # clean MXU contraction tiles and unmasked (lane-dense) loads/stores.
        enc_p = _round_up(enc_dim, 128)
        feat_p = _round_up(feature_dim, 128)
        featm_p = _round_up(feature_dim_m, 128)
        # TODO(synk): KPConv encoder/decoder blocks (block_decider) and the Transformer
        # cross-attention are external modules not provided; stand-ins are pointwise
        # linears (transformer == identity), fused into a single Pallas MLP kernel.
        self.enc_w, self.enc_b = _init_linear_padded(keys[0], in_dim, enc_dim, in_dim, enc_p)
        self.bottle_w, self.bottle_b = _init_linear_padded(keys[1], enc_dim, feature_dim,
                                                           enc_p, feat_p)
        self.dec_w, self.dec_b = _init_linear_padded(keys[2], feature_dim, feature_dim_m,
                                                     feat_p, featm_p)
        self.vis_w, self.vis_b = _init_linear_padded(keys[3], feature_dim_m, 1, featm_p, 1)
        # proj_match_score is defined in __init__ but unused by forward (kept for parity).
        self.match_w, self.match_b = _init_linear_padded(keys[4], feature_dim_m, 1, featm_p, 1)

    def forward(self, batch):
        x = jnp.asarray(batch["features"], jnp.float32)
        len_src_c = batch["stack_lengths"][-1][0]   # coarse split (transformer stand-in is identity)
        len_src_f = batch["stack_lengths"][0][0]
        del len_src_c

        # ---- encoder + bottleneck + decoder + vis head: ONE fused row-tiled kernel ----
        feats_full, vis_all = fused_pointwise_mlp3_vis(
            x, self.enc_w, self.enc_b, self.bottle_w, self.bottle_b,
            self.dec_w, self.dec_b, self.vis_w, self.vis_b)          # bf16 [N, Cpad], f32 [N]
        # feats stored as bf16 (review: halve the writeback); view keeps the model dim.
        batch["feats"] = feats_full[:, : self.c_out]
        src_feats_b16 = feats_full[:len_src_f]
        tgt_feats_b16 = feats_full[len_src_f:]

        # ---- global matching: two-pass dual softmax, single exp in pass B, bf16 conf ----
        conf_matrix_pred, sim_rowsum = matching_pallas(src_feats_b16[None], tgt_feats_b16[None])
        conf_np = np.asarray(conf_matrix_pred).astype(np.float32)
        match_pred = extract_matches(conf_np)
        batch["conf_matrix_pred"] = conf_matrix_pred
        batch["match_pred"] = match_pred
        # TODO(synk): torch.save(feats, ...) omitted — no file I/O allowed here.

        # visibility scores (fused with the MLP kernel; lane-dense slab already on device)
        scores_vis = vis_all[:len_src_f]
        batch["scores_vis"] = scores_vis

        src_pcd = jnp.asarray(batch["src_pcd_raw"], jnp.float32)
        tgt_pcd = jnp.asarray(batch["tgt_pcd_raw"], jnp.float32)
        src_pcd_np = np.asarray(src_pcd)
        tgt_pcd_np = np.asarray(tgt_pcd)

        # ------------------------- eval branch ---------------------------------
        # TODO(synk): training branch (random correspondence sampling) not implemented.
        src_conf = np.asarray(sim_rowsum[0])                   # == sim_matrix.sum(dim=2)
        src_idx = np.argsort(-src_conf)
        vis_src_pcd = src_pcd[src_idx[: tgt_pcd.shape[0]].astype(np.int32)]
        cluster_num = self.k
        fps_idx = furthest_point_sample_np(np.asarray(vis_src_pcd), cluster_num)
        src_node = vis_src_pcd[fps_idx.astype(np.int32)]
        batch["vis_src_pcd"] = vis_src_pcd

        win_size = int(min(tgt_pcd.shape[0], src_pcd.shape[0]))
        src_indices_cl = generate_node_clusters(src_pcd, src_node, point_limit=win_size)
        src_xyz_cl = jnp.take(src_pcd, src_indices_cl, axis=0)             # [K, win, 3]
        src_feats_cl = jnp.take(src_feats_b16, src_indices_cl, axis=0)     # [K, win, Cpad] bf16
        batch["src_xyz_cl"] = src_xyz_cl

        # cluster matching: single shared [1, T, C] target (no K-way broadcast in HBM)
        conf_matrix_pred_cl, _ = matching_pallas(src_feats_cl, tgt_feats_b16[None])
        conf_cl_np = np.asarray(conf_matrix_pred_cl).astype(np.float32)
        match_pred_cl = extract_matches(conf_cl_np)
        batch["conf_matrix_pred_cl"] = conf_matrix_pred_cl
        batch["match_pred_cl"] = match_pred_cl

        # ---------------- batched rigid fits: slot 0 = global, slots 1.. = clusters ----------------
        mp_g = np.asarray(match_pred)
        corr_g = mp_g[:, 1:]
        src_id = mp_g[:, 1]
        tgt_id = mp_g[:, 2]
        w_g = conf_np[0, src_id, tgt_id]

        mp_cl = np.asarray(match_pred_cl)
        cl_unique = np.unique(mp_cl[:, 0])
        idx_cl_np = np.asarray(src_indices_cl)
        src_xyz_cl_np = np.asarray(src_xyz_cl)

        per_cluster, cl_corr, cl_corr_g = [], [], []
        for cl_i in cl_unique:
            mpi = mp_cl[mp_cl[:, 0] == cl_i]
            s_id, t_id = mpi[:, 1], mpi[:, 2]
            per_cluster.append((int(cl_i), s_id, t_id))
            cl_corr.append(np.stack((s_id, t_id), axis=1))
            cl_corr_g.append(np.stack((idx_cl_np[int(cl_i), s_id], t_id), axis=1))

        k_cl = len(per_cluster)
        k_tot = k_cl + 1
        n_max = max([len(src_id)] + [len(s) for _, s, _ in per_cluster] + [1])
        # [K, 3, Nmax]: coords on sublanes, points on lanes (full-width VPU math in-kernel)
        src_pad = np.zeros((k_tot, 3, n_max), np.float32)
        ref_pad = np.zeros((k_tot, 3, n_max), np.float32)
        w_pad = np.zeros((k_tot, n_max), np.float32)
        msk_pad = np.zeros((k_tot, n_max), np.float32)
        m0 = len(src_id)
        src_pad[0, :, :m0] = src_pcd_np[src_id].T
        ref_pad[0, :, :m0] = tgt_pcd_np[tgt_id].T
        w_pad[0, :m0] = w_g
        msk_pad[0, :m0] = 1.0
        for ci, (cl_i, s_id, t_id) in enumerate(per_cluster):
            mm = len(s_id)
            src_pad[ci + 1, :, :mm] = src_xyz_cl_np[cl_i, s_id].T
            ref_pad[ci + 1, :, :mm] = tgt_pcd_np[t_id].T
            w_pad[ci + 1, :mm] = conf_cl_np[cl_i, s_id, t_id]
            msk_pad[ci + 1, :mm] = 1.0

        R_all, t_all = batched_weighted_procrustes(
            jnp.asarray(src_pad), jnp.asarray(ref_pad), jnp.asarray(w_pad))

        # one batched, fully tiled chamfer residual per transform (global + clusters)
        cp_res_all = chamfer_cp_res(src_pcd, tgt_pcd, R_all, t_all)

        # per-cluster masked residual mean / inlier count (batched)
        res_mean, inlier_cnt = cluster_residual_stats(
            jnp.asarray(src_pad[1:]), jnp.asarray(ref_pad[1:]),
            jnp.asarray(msk_pad[1:]), R_all[1:], t_all[1:])

        # single deferred host sync for all scalar rigid-fit results
        R_all_np, t_all_np, cp_res_np, res_mean_np, inlier_np = jax.device_get(
            (R_all, t_all, cp_res_all, res_mean, inlier_cnt))

        cl_R = [R_all[i] for i in range(k_tot)]
        cl_t = [t_all[i] for i in range(k_tot)]
        CP_res = [float(v) for v in cp_res_np]
        cl_res = [float(v) for v in res_mean_np]
        cl_inlier = [int(round(float(v))) for v in inlier_np]

        min_index = cl_res.index(min(cl_res)) + 1
        min_index_il = cl_inlier.index(max(cl_inlier)) + 1
        min_index_cp = CP_res.index(min(CP_res))

        cl_corr_g_arr = np.concatenate(cl_corr_g, axis=0)
        matches_all = np.concatenate([cl_corr_g_arr, corr_g], axis=0)
        cl_corr_g_unique = np.unique(cl_corr_g_arr, axis=0)
        matches_all_unique = np.unique(matches_all, axis=0)

        # filter all correspondences with residual under the best (chamfer) transform
        rot_best = R_all_np[min_index_cp]
        trans_best = t_all_np[min_index_cp]
        res_b = point_residuals(src_pcd_np[matches_all_unique[:, 0]],
                                tgt_pcd_np[matches_all_unique[:, 1]],
                                rot_best, trans_best)
        matches_all_unique = matches_all_unique[np.asarray(res_b) < 0.1]

        batch.update({
            "R_cl": cl_R, "t_cl": cl_t, "CP_res": CP_res,
            "best_index": min_index, "best_index_il": min_index_il,
            "best_index_cp": min_index_cp, "cl_corr": cl_corr,
            "cl_corr_g_unique": cl_corr_g_unique,
            "matches_all_unique": matches_all_unique,
        })
        return batch


# ----------------------------------------------------------------------------
if __name__ == "__main__":
    key = jax.random.PRNGKey(0)
    k_src, k_tgt, k_model = jax.random.split(key, 3)

    n_src, n_tgt = 48, 32
    config = dict(in_feats_dim=4, enc_dim=32, feature_dim=32, feature_dim_m=32)
    model = KPFCNNPallas(k_model, config, K=5)

    src_pcd = jax.random.uniform(k_src, (n_src, 3), jnp.float32)
    tgt_pcd = jax.random.uniform(k_tgt, (n_tgt, 3), jnp.float32)
    features = jnp.ones((n_src + n_tgt, config["in_feats_dim"]), jnp.float32)

    batch = {
        "features": features,
        # no pooling in the (stand-in) encoder -> coarse lengths == fine lengths
        "stack_lengths": [(n_src, n_tgt), (n_src, n_tgt)],
        "src_pcd_raw": src_pcd,
        "tgt_pcd_raw": tgt_pcd,
    }

    out = model.forward(batch)
    jax.block_until_ready((
        out["feats"],
        out["conf_matrix_pred"],
        out["conf_matrix_pred_cl"],
        out["scores_vis"],
        out["R_cl"][0],
        out["t_cl"][0],
    ))
    print("KERNEL_OK")
</pallas_src>

<mosaic_0001>
module attributes {stable_mosaic.version = 11 : i64} {
  func.func @_mlp3_vis_kernel(%arg0: i32, %arg1: memref<80x4xbf16, #tpu.memory_space<vmem>>, %arg2: memref<4x128xbf16, #tpu.memory_space<vmem>>, %arg3: memref<1x128xf32, #tpu.memory_space<vmem>>, %arg4: memref<128x128xbf16, #tpu.memory_space<vmem>>, %arg5: memref<1x128xf32, #tpu.memory_space<vmem>>, %arg6: memref<128x128xbf16, #tpu.memory_space<vmem>>, %arg7: memref<1x128xf32, #tpu.memory_space<vmem>>, %arg8: memref<1x128xbf16, #tpu.memory_space<vmem>>, %arg9: memref<1x1xf32, #tpu.memory_space<vmem>>, %arg10: memref<80x128xbf16, #tpu.memory_space<vmem>>, %arg11: memref<1x80xf32, #tpu.memory_space<vmem>>) attributes {dimension_semantics = [#tpu.dimension_semantics<parallel>], iteration_bounds = array<i64: 1>, scalar_prefetch = 0 : i64, scratch_operands = 0 : i64, tpu.core_type = #tpu.core_type<tc>, window_params = [{transform_indices = @transform_0, window_bounds = array<i64: 80, 4>}, {pipeline_mode = #tpu.pipeline_mode<synchronous>, transform_indices = @transform_1, window_bounds = array<i64: 4, 128>}, {pipeline_mode = #tpu.pipeline_mode<synchronous>, transform_indices = @transform_2, window_bounds = array<i64: 1, 128>}, {pipeline_mode = #tpu.pipeline_mode<synchronous>, transform_indices = @transform_3, window_bounds = array<i64: 128, 128>}, {pipeline_mode = #tpu.pipeline_mode<synchronous>, transform_indices = @transform_4, window_bounds = array<i64: 1, 128>}, {pipeline_mode = #tpu.pipeline_mode<synchronous>, transform_indices = @transform_5, window_bounds = array<i64: 128, 128>}, {pipeline_mode = #tpu.pipeline_mode<synchronous>, transform_indices = @transform_6, window_bounds = array<i64: 1, 128>}, {pipeline_mode = #tpu.pipeline_mode<synchronous>, transform_indices = @transform_7, window_bounds = array<i64: 1, 128>}, {pipeline_mode = #tpu.pipeline_mode<synchronous>, transform_indices = @transform_8, window_bounds = array<i64: 1, 1>}, {transform_indices = @transform_9, window_bounds = array<i64: 80, 128>}, {transform_indices = @transform_10, window_bounds = array<i64: 1, 80>}]} {
    %c0 = arith.constant 0 : index
    %c0_0 = arith.constant 0 : index
    %0 = vector.load %arg1[%c0, %c0_0] : memref<80x4xbf16, #tpu.memory_space<vmem>>, vector<80x4xbf16>
    %c0_1 = arith.constant 0 : index
    %c0_2 = arith.constant 0 : index
    %1 = vector.load %arg2[%c0_1, %c0_2] : memref<4x128xbf16, #tpu.memory_space<vmem>>, vector<4x128xbf16>
    %cst = arith.constant dense<0.000000e+00> : vector<80x128xf32>
    %2 = tpu.matmul %0, %1, %cst {dimension_numbers = #tpu.dot_dimension_numbers<[1], [0], [0], [1], [0, 0, 1, 1], [], []>} : vector<80x4xbf16>, vector<4x128xbf16>, vector<80x128xf32> -> vector<80x128xf32>
    %c0_3 = arith.constant 0 : index
    %c0_4 = arith.constant 0 : index
    %3 = vector.load %arg3[%c0_3, %c0_4] : memref<1x128xf32, #tpu.memory_space<vmem>>, vector<1x128xf32>
    %4 = vector.broadcast %3 : vector<1x128xf32> to vector<80x128xf32>
    %5 = arith.addf %2, %4 : vector<80x128xf32>
    %6 = arith.truncf %5 : vector<80x128xf32> to vector<80x128xbf16>
    %c0_5 = arith.constant 0 : index
    %c0_6 = arith.constant 0 : index
    %7 = vector.load %arg4[%c0_5, %c0_6] : memref<128x128xbf16, #tpu.memory_space<vmem>>, vector<128x128xbf16>
    %cst_7 = arith.constant dense<0.000000e+00> : vector<80x128xf32>
    %8 = tpu.matmul %6, %7, %cst_7 {dimension_numbers = #tpu.dot_dimension_numbers<[1], [0], [0], [1], [0, 0, 1, 1], [], []>} : vector<80x128xbf16>, vector<128x128xbf16>, vector<80x128xf32> -> vector<80x128xf32>
    %c0_8 = arith.constant 0 : index
    %c0_9 = arith.constant 0 : index
    %9 = vector.load %arg5[%c0_8, %c0_9] : memref<1x128xf32, #tpu.memory_space<vmem>>, vector<1x128xf32>
    %10 = vector.broadcast %9 : vector<1x128xf32> to vector<80x128xf32>
    %11 = arith.addf %8, %10 : vector<80x128xf32>
    %12 = arith.truncf %11 : vector<80x128xf32> to vector<80x128xbf16>
    %c0_10 = arith.constant 0 : index
    %c0_11 = arith.constant 0 : index
    %13 = vector.load %arg6[%c0_10, %c0_11] : memref<128x128xbf16, #tpu.memory_space<vmem>>, vector<128x128xbf16>
    %cst_12 = arith.constant dense<0.000000e+00> : vector<80x128xf32>
    %14 = tpu.matmul %12, %13, %cst_12 {dimension_numbers = #tpu.dot_dimension_numbers<[1], [0], [0], [1], [0, 0, 1, 1], [], []>} : vector<80x128xbf16>, vector<128x128xbf16>, vector<80x128xf32> -> vector<80x128xf32>
    %c0_13 = arith.constant 0 : index
    %c0_14 = arith.constant 0 : index
    %15 = vector.load %arg7[%c0_13, %c0_14] : memref<1x128xf32, #tpu.memory_space<vmem>>, vector<1x128xf32>
    %16 = vector.broadcast %15 : vector<1x128xf32> to vector<80x128xf32>
    %17 = arith.addf %14, %16 : vector<80x128xf32>
    %18 = arith.truncf %17 : vector<80x128xf32> to vector<80x128xbf16>
    %c0_15 = arith.constant 0 : index
    %c0_16 = arith.constant 0 : index
    %19 = vector.load %arg10[%c0_15, %c0_16] : memref<80x128xbf16, #tpu.memory_space<vmem>>, vector<80x128xbf16>
    tpu.vector_store %arg10[%c0_15, %c0_16], %18 {strides = array<i32>} : memref<80x128xbf16, #tpu.memory_space<vmem>>, vector<80x128xbf16>,
    %c0_17 = arith.constant 0 : index
    %c0_18 = arith.constant 0 : index
    %20 = vector.load %arg8[%c0_17, %c0_18] : memref<1x128xbf16, #tpu.memory_space<vmem>>, vector<1x128xbf16>
    %cst_19 = arith.constant dense<0.000000e+00> : vector<1x80xf32>
    %21 = tpu.matmul %20, %18, %cst_19 {dimension_numbers = #tpu.dot_dimension_numbers<[1], [1], [0], [0], [0, 0, 1, 0], [], []>} : vector<1x128xbf16>, vector<80x128xbf16>, vector<1x80xf32> -> vector<1x80xf32>
    %c0_20 = arith.constant 0 : index
    %c0_21 = arith.constant 0 : index
    %22 = vector.load %arg9[%c0_20, %c0_21] : memref<1x1xf32, #tpu.memory_space<vmem>>, vector<1x1xf32>
    %23 = vector.broadcast %22 : vector<1x1xf32> to vector<1x80xf32>
    %24 = arith.addf %21, %23 : vector<1x80xf32>
    %25 = arith.negf %24 : vector<1x80xf32>
    %26 = math.exp %25 : vector<1x80xf32>
    %cst_22 = arith.constant 1.000000e+00 : f32
    %27 = vector.broadcast %cst_22 : f32 to vector<1x80xf32>
    %28 = arith.addf %27, %26 : vector<1x80xf32>
    %29 = arith.divf %27, %28 : vector<1x80xf32>
    %cst_23 = arith.constant 0.000000e+00 : f32
    %cst_24 = arith.constant 1.000000e+00 : f32
    %30 = vector.broadcast %cst_23 : f32 to vector<1x80xf32>
    %31 = arith.maximumf %30, %29 : vector<1x80xf32>
    %32 = vector.broadcast %cst_24 : f32 to vector<1x80xf32>
    %33 = arith.minimumf %32, %31 : vector<1x80xf32>
    %c0_25 = arith.constant 0 : index
    %c0_26 = arith.constant 0 : index
    %34 = vector.load %arg11[%c0_25, %c0_26] : memref<1x80xf32, #tpu.memory_space<vmem>>, vector<1x80xf32>
    tpu.vector_store %arg11[%c0_25, %c0_26], %33 {strides = array<i32>} : memref<1x80xf32, #tpu.memory_space<vmem>>, vector<1x80xf32>,
    return
  }
  func.func @transform_0(%arg0: i32) -> (i32, i32) {
    %c0_i32 = arith.constant 0 : i32
    %c0_i32_0 = arith.constant 0 : i32
    return %arg0, %c0_i32 : i32, i32
  }
  func.func @transform_1(%arg0: i32) -> (i32, i32) {
    %c0_i32 = arith.constant 0 : i32
    %c0_i32_0 = arith.constant 0 : i32
    %c0_i32_1 = arith.constant 0 : i32
    return %c0_i32, %c0_i32_0 : i32, i32
  }
  func.func @transform_2(%arg0: i32) -> (i32, i32) {
    %c0_i32 = arith.constant 0 : i32
    %c0_i32_0 = arith.constant 0 : i32
    %c0_i32_1 = arith.constant 0 : i32
    return %c0_i32, %c0_i32_0 : i32, i32
  }
  func.func @transform_3(%arg0: i32) -> (i32, i32) {
    %c0_i32 = arith.constant 0 : i32
    %c0_i32_0 = arith.constant 0 : i32
    %c0_i32_1 = arith.constant 0 : i32
    return %c0_i32, %c0_i32_0 : i32, i32
  }
  func.func @transform_4(%arg0: i32) -> (i32, i32) {
    %c0_i32 = arith.constant 0 : i32
    %c0_i32_0 = arith.constant 0 : i32
    %c0_i32_1 = arith.constant 0 : i32
    return %c0_i32, %c0_i32_0 : i32, i32
  }
  func.func @transform_5(%arg0: i32) -> (i32, i32) {
    %c0_i32 = arith.constant 0 : i32
    %c0_i32_0 = arith.constant 0 : i32
    %c0_i32_1 = arith.constant 0 : i32
    return %c0_i32, %c0_i32_0 : i32, i32
  }
  func.func @transform_6(%arg0: i32) -> (i32, i32) {
    %c0_i32 = arith.constant 0 : i32
    %c0_i32_0 = arith.constant 0 : i32
    %c0_i32_1 = arith.constant 0 : i32
    return %c0_i32, %c0_i32_0 : i32, i32
  }
  func.func @transform_7(%arg0: i32) -> (i32, i32) {
    %c0_i32 = arith.constant 0 : i32
    %c0_i32_0 = arith.constant 0 : i32
    %c0_i32_1 = arith.constant 0 : i32
    return %c0_i32, %c0_i32_0 : i32, i32
  }
  func.func @transform_8(%arg0: i32) -> (i32, i32) {
    %c0_i32 = arith.constant 0 : i32
    %c0_i32_0 = arith.constant 0 : i32
    %c0_i32_1 = arith.constant 0 : i32
    return %c0_i32, %c0_i32_0 : i32, i32
  }
  func.func @transform_9(%arg0: i32) -> (i32, i32) {
    %c0_i32 = arith.constant 0 : i32
    %c0_i32_0 = arith.constant 0 : i32
    return %arg0, %c0_i32 : i32, i32
  }
  func.func @transform_10(%arg0: i32) -> (i32, i32) {
    %c0_i32 = arith.constant 0 : i32
    %c0_i32_0 = arith.constant 0 : i32
    return %c0_i32, %arg0 : i32, i32
  }
}

</mosaic_0001>

<bundles_post_ra>
// kernel: tpu_custom_call.1
= control target key start
LH: loop header
LB: loop body
LE: loop exit
PB: predicated region body
PF: predicated region fallthrough
CT: control target
= control target key end

     0   :  { %s1321_s0 = inlined_call_operand.vmem [shape: bf16[80,4], index: 0, kind: input, shape index: {}]   ;;  %s1322_s1 = inlined_call_operand.hbm [shape: bf16[4,128], index: 1, kind: input, shape index: {}]   ;;  %s1323_s2 = inlined_call_operand.hbm [shape: f32[1,128], index: 2, kind: input, shape index: {}]   ;;  %s1324_s3 = inlined_call_operand.hbm [shape: bf16[128,128], index: 3, kind: input, shape index: {}]   ;;  %s1325_s4 = inlined_call_operand.hbm [shape: f32[1,128], index: 4, kind: input, shape index: {}]   ;;  %s1326_s5 = inlined_call_operand.vmem [shape: bf16[128,128], index: 5, kind: input, shape index: {}]   ;;  %s1327_s6 = inlined_call_operand.vmem [shape: f32[1,128], index: 6, kind: input, shape index: {}]   ;;  %s1328_s7 = inlined_call_operand.vmem [shape: bf16[1,128], index: 7, kind: input, shape index: {}]   ;;  %s1329_s8 = inlined_call_operand.<no memory space> [shape: f32[1,1], index: 8, kind: input, shape index: {}]   ;;  %s1330_s9 = inlined_call_operand.hbm [shape: bf16[80,128], index: 9, kind: output, shape index: {0}]   ;;  %s1331_s10 = inlined_call_operand.hbm [shape: f32[1,80], index: 10, kind: output, shape index: {1}]  }
   0x1   :  { %v16_v0 = vstv %s1329_s8 }
   0x2   :  { %17 = vst [vmem:[#allocation2] sm:$0x1] %v16_v0 }
   0x3   :  { %18 = vsyncpa [#allocation4], 0 }
   0x4   :  { %19 = vsyncpa [#allocation7], 0 }
   0x5   :  { %20 = vsyncpa [#allocation10], 0 }
   0x6   :  { %21 = vsyncpa [#allocation5], 0 }
   0x7   :  { %22 = vsyncpa [#allocation13], 0  ;;  %s1070_s15 = smov [#allocation6]   ;;  %s1071_s17 = smov [#allocation3]  }
   0x8   :  { %s41_s16 = sshll.u32 %s1070_s15, 4  ;;  %s31_s18 = sshll.u32 %s1071_s17, 4  ;;  %s42_s16 = int_to_ptr.vmem [resolvable:$true] %s41_s16  ;;  %s32_s18 = int_to_ptr.vmem [resolvable:$true] %s31_s18 }
   0x9   :  { %s928_s21 = scalar_lea.hbm %s1323_s2, 16 }
   0xa   :  { %p929_p0 = scmp.ne.s32.totalorder %s1323_s2, %s928_s21  ;;  %p932_p1 = scmp.lt.u32.totalorder %s928_s21, %s1323_s2 }
   0xc   :  { %p934_p2 = pnand %p932_p1, %p929_p0 }
   0xe   :  { %937 = shalt.err (!%p934_p2)
}
   0xf   :  { %s938_s25 = scalar_lea.vmem %s42_s16, 16  ;;  %s942_s26 = scalar_lea.vmem %s42_s16, 32 }
  0x10   :  { %p939_p3 = scmp.ne.s32.totalorder %s42_s16, %s938_s25  ;;  %p943_p4 = scmp.lt.s32.totalorder %s42_s16, %s42_s16 }
  0x11   :  { %p944_p5 = scmp.lt.s32.totalorder %s942_s26, %s938_s25 }
  0x13   :  { %p945_p6 = por %p944_p5, %p943_p4 }
  0x15   :  { %p946_p7 = pnand %p945_p6, %p939_p3 }
  0x17   :  { %949 = shalt.err (!%p946_p7)
}
  0x18   :  { %44 = dma.hbm_to_vmem [thread:$0]  %s1323_s2, 16, %s42_s16, [#allocation7]  }
  0x19   :  { %s950_s11 = scalar_lea.hbm %s1322_s1, 32 }
  0x1a   :  { %p951_p8 = scmp.ne.s32.totalorder %s1322_s1, %s950_s11  ;;  %p954_p9 = scmp.lt.u32.totalorder %s950_s11, %s1322_s1 }
  0x1c   :  { %p956_p10 = pnand %p954_p9, %p951_p8 }
  0x1e   :  { %959 = shalt.err (!%p956_p10)
}
  0x1f   :  { %s960_s17 = scalar_lea.vmem %s32_s18, 32  ;;  %p965_p12 = scmp.lt.s32.totalorder %s32_s18, %s32_s18 }
  0x20   :  { %p961_p11 = scmp.ne.s32.totalorder %s32_s18, %s960_s17  ;;  %p966_p13 = scmp.lt.s32.totalorder %s960_s17, %s960_s17 }
  0x22   :  { %p967_p0 = por %p966_p13, %p965_p12 }
  0x24   :  { %p968_p1 = pnand %p967_p0, %p961_p11 }
  0x26   :  { %971 = shalt.err (!%p968_p1)
}
  0x27   :  { %34 = dma.hbm_to_vmem [thread:$0]  %s1322_s1, 32, %s32_s18, [#allocation4]  }
  0x28   :  { %s1072_s19 = smov [#allocation8]   ;;  %s972_s23 = scalar_lea.hbm %s1324_s3, 1024 }
  0x29   :  { %s50_s20 = sshll.u32 %s1072_s19, 4  ;;  %p973_p2 = scmp.ne.s32.totalorder %s1324_s3, %s972_s23  ;;  %s51_s20 = int_to_ptr.vmem [resolvable:$true] %s50_s20 }
  0x2a   :  { %p976_p3 = scmp.lt.u32.totalorder %s972_s23, %s1324_s3 }
  0x2c   :  { %p978_p4 = pnand %p976_p3, %p973_p2 }
  0x2e   :  { %981 = shalt.err (!%p978_p4)
}
  0x2f   :  { %s982_s27 = scalar_lea.vmem %s51_s20, 1024  ;;  %p987_p6 = scmp.lt.s32.totalorder %s51_s20, %s51_s20 }
  0x30   :  { %p983_p5 = scmp.ne.s32.totalorder %s51_s20, %s982_s27  ;;  %p988_p7 = scmp.lt.s32.totalorder %s982_s27, %s982_s27 }
  0x32   :  { %p989_p8 = por %p988_p7, %p987_p6 }
  0x34   :  { %p990_p9 = pnand %p989_p8, %p983_p5 }
  0x36   :  { %993 = shalt.err (!%p990_p9)
}
  0x37   :  { %s1073_s1 = smov 64   ;;  %s1074_s18 = smov 4  }
  0x38   :  { %56 = dma.hbm_to_vmem [thread:$0]  %s1324_s3, 1024, %s51_s20, [#allocation7], %s1073_s1, %s1073_s1, %s1074_s18  }
  0x39   :  { %s1075_s30 = smov [#allocation9]   ;;  %s994_s14 = scalar_lea.hbm %s1325_s4, 16 }
  0x3a   :  { %s63_s11 = sshll.u32 %s1075_s30, 4  ;;  %p995_p10 = scmp.ne.s32.totalorder %s1325_s4, %s994_s14  ;;  %s64_s11 = int_to_ptr.vmem [resolvable:$true] %s63_s11 }
  0x3b   :  { %p998_p11 = scmp.lt.u32.totalorder %s994_s14, %s1325_s4 }
  0x3d   :  { %p1000_p12 = pnand %p998_p11, %p995_p10 }
  0x3f   :  { %1003 = shalt.err (!%p1000_p12)
}
  0x40   :  { %s1004_s19 = scalar_lea.vmem %s64_s11, 16  ;;  %s1008_s3 = scalar_lea.vmem %s64_s11, 32 }
  0x41   :  { %p1005_p13 = scmp.ne.s32.totalorder %s64_s11, %s1004_s19  ;;  %p1009_p0 = scmp.lt.s32.totalorder %s64_s11, %s64_s11 }
  0x42   :  { %p1010_p1 = scmp.lt.s32.totalorder %s1008_s3, %s1004_s19 }
  0x44   :  { %p1011_p2 = por %p1010_p1, %p1009_p0 }
  0x46   :  { %p1012_p3 = pnand %p1011_p2, %p1005_p13 }
  0x48   :  { %1015 = shalt.err (!%p1012_p3)
}
  0x49   :  { %66 = dma.hbm_to_vmem [thread:$0]  %s1325_s4, 16, %s64_s11, [#allocation10]  }
  0x4a   :  { %1060 = dma.done.wait [#allocation4], 32  }
  0x4b   :  { %1061 = vsyncadd [#allocation4], 4294967264 }
  0x4c   :  { %1062 = dma.done.wait [#allocation7], 1040  }
  0x4d   :  { %1063 = vsyncadd [#allocation7], 4294966256 }
  0x4e   :  { %1064 = dma.done.wait [#allocation10], 16  }
  0x4f   :  { %1065 = vsyncadd [#allocation10], 4294967280  ;;  %v1076_v1 = vmov 0.0   ;;  %vm1077_vm0 = vmmov 0   ;;  %vm147_vm1 = vcmask 1041408   ;;  %v903_v4 = vld [vmem:[%s1321_s0] sm:$0xff]  }
  0x50   :  { %783 = vmatprep.subr.bf16.mxu0 %v1076_v1  ;;  %785 = vmatprep.mubr.msk.bf16.mxu0 %vm1077_vm0, %v1076_v1  ;;  %v98_v2 = vld [vmem:[#allocation3] sm:$0x3]  ;;  %vm131_vm2 = vcmask 31744   ;;  %v908_v5 = vld [vmem:[#allocation8] sm:$0xff]   ;;  %v909_v6 = vld [vmem:[#allocation8 + $0x8] sm:$0xff]   ;;  %s1079_s24 = smov [#allocation11]  }
  0x51   :  { %805 = vmatprep.subr.bf16.mxu1 %v1076_v1  ;;  %821 = vmatprep.mubr.msk.bf16.mxu1 %vm1077_vm0, %v1076_v1  ;;  %v149_v3 = vsel %vm147_vm1, %v98_v2, 0  ;;  %v904_v7 = vld [vmem:[%s1321_s0 + $0x8] sm:$0xff]   ;;  %v910_v8 = vld [vmem:[#allocation8 + $0x10] sm:$0xff]   ;;  %v911_v9 = vld [vmem:[#allocation8 + $0x18] sm:$0xff]   ;;  %s638_s25 = sshll.u32 %s1079_s24, 4  ;;  %s639_s25 = int_to_ptr.vmem [resolvable:$true] %s638_s25 }
  0x52   :  { %784 = vmatpush3.bf16.msra.mxu0 %v149_v3  ;;  %806 = vmatpush3.bf16.msra.mxu1 %v908_v5  ;;  %v905_v10 = vld [vmem:[%s1321_s0 + $0x10] sm:$0xff]   ;;  %v912_v11 = vld [vmem:[#allocation8 + $0x20] sm:$0xff]   ;;  %v906_v13 = vld [vmem:[%s1321_s0 + $0x18] sm:$0xff]   ;;  %s1016_s26 = scalar_lea.vmem %s639_s25, 640  ;;  %p1021_p5 = scmp.lt.s32.totalorder %s639_s25, %s639_s25 }
  0x53   :  { %841 = vmatprep.subr.bf16.mxu0 %v1076_v1  ;;  %807 = vmatprep.subr.bf16.mxu1 %v1076_v1  ;;  %v913_v12 = vld [vmem:[#allocation8 + $0x28] sm:$0xff]   ;;  %v907_v14 = vld [vmem:[%s1321_s0 + $0x20] sm:$0xff]   ;;  %v914_v15 = vld [vmem:[#allocation8 + $0x30] sm:$0xff]   ;;  %p1017_p4 = scmp.ne.s32.totalorder %s639_s25, %s1016_s26  ;;  %p1022_p6 = scmp.lt.s32.totalorder %s1016_s26, %s1016_s26 }
  0x54   :  { %v915_v16 = vld [vmem:[#allocation8 + $0x38] sm:$0xff]   ;;  %v917_v18 = vld [vmem:[%s1326_s5 + $0x8] sm:$0xff]   ;;  %v918_v19 = vld [vmem:[%s1326_s5 + $0x10] sm:$0xff]  }
  0x55   :  { %786 = vmatmul.mubr.msk.bf16.vlgmr.msra.gmra.mrb[0].mxu0 %vm131_vm2, %v903_v4  ;;  %v916_v17 = vld [vmem:[%s1326_s5] sm:$0xff]   ;;  %v919_v20 = vld [vmem:[%s1326_s5 + $0x18] sm:$0xff]   ;;  %v921_v22 = vld [vmem:[%s1326_s5 + $0x28] sm:$0xff]   ;;  %p1023_p7 = por %p1022_p6, %p1021_p5 }
  0x56   :  { %789 = vmatprep.mubr.msk.bf16.mxu0 %vm1077_vm0, %v1076_v1  ;;  %808 = vmatpush3.bf16.msra.mxu1 %v909_v6  ;;  %v920_v21 = vld [vmem:[%s1326_s5 + $0x20] sm:$0xff]   ;;  %v922_v23 = vld [vmem:[%s1326_s5 + $0x30] sm:$0xff]   ;;  %v923_v60 = vld [vmem:[%s1326_s5 + $0x38] sm:$0xff]  }
  0x57   :  { %809 = vmatprep.subr.bf16.mxu1 %v1076_v1  ;;  %842 = vmatpush3.bf16.msra.mxu0 %v916_v17  ;;  %v666_v24 = vld [vmem:[#allocation6] ss:$0 sm:$0xff]  ;;  %v677_v61 = vld [vmem:[#allocation9] ss:$0 sm:$0xff]  ;;  %p1024_p8 = pnand %p1023_p7, %p1017_p4 }
  0x58   :  { %843 = vmatprep.subr.bf16.mxu0 %v1076_v1 }
  0x5a   :  { %810 = vmatpush3.bf16.msra.mxu1 %v910_v8 }
  0x5b   :  { %811 = vmatprep.subr.bf16.mxu1 %v1076_v1  ;;  %844 = vmatpush3.bf16.msra.mxu0 %v917_v18 }
  0x5c   :  { %845 = vmatprep.subr.bf16.mxu0 %v1076_v1 }
  0x5d   :  { %790 = vmatmul.mubr.msk.bf16.gmra.mrb[4].mxu0 %vm131_vm2, %v904_v7 }
  0x5e   :  { %793 = vmatprep.mubr.msk.bf16.mxu0 %vm1077_vm0, %v1076_v1  ;;  %812 = vmatpush3.bf16.msra.mxu1 %v911_v9 }
  0x5f   :  { %813 = vmatprep.subr.bf16.mxu1 %v1076_v1  ;;  %846 = vmatpush3.bf16.msra.mxu0 %v918_v19 }
  0x60   :  { %847 = vmatprep.subr.bf16.mxu0 %v1076_v1 }
  0x62   :  { %814 = vmatpush3.bf16.msra.mxu1 %v912_v11 }
  0x63   :  { %815 = vmatprep.subr.bf16.mxu1 %v1076_v1  ;;  %848 = vmatpush3.bf16.msra.mxu0 %v919_v20 }
  0x64   :  { %849 = vmatprep.subr.bf16.mxu0 %v1076_v1 }
  0x65   :  { %794 = vmatmul.mubr.msk.bf16.gmra.mrb[8].mxu0 %vm131_vm2, %v905_v10 }
  0x66   :  { %797 = vmatprep.mubr.msk.bf16.mxu0 %vm1077_vm0, %v1076_v1  ;;  %816 = vmatpush3.bf16.msra.mxu1 %v913_v12 }
  0x67   :  { %817 = vmatprep.subr.bf16.mxu1 %v1076_v1  ;;  %850 = vmatpush3.bf16.msra.mxu0 %v920_v21 }
  0x68   :  { %851 = vmatprep.subr.bf16.mxu0 %v1076_v1 }
  0x6a   :  { %818 = vmatpush3.bf16.msra.mxu1 %v914_v15 }
  0x6b   :  { %819 = vmatprep.subr.bf16.mxu1 %v1076_v1  ;;  %852 = vmatpush3.bf16.msra.mxu0 %v921_v22 }
  0x6c   :  { %853 = vmatprep.subr.bf16.mxu0 %v1076_v1 }
  0x6d   :  { %798 = vmatmul.mubr.msk.bf16.gmra.mrb[12].mxu0 %vm131_vm2, %v906_v13 }
  0x6e   :  { %801 = vmatprep.mubr.msk.bf16.mxu0 %vm1077_vm0, %v1076_v1  ;;  %820 = vmatpush3.bf16.msra.mxu1 %v915_v16 }
  0x6f   :  { %877 = vmatprep.subr.bf16.mxu1 %v1076_v1  ;;  %854 = vmatpush3.bf16.msra.mxu0 %v922_v23 }
  0x70   :  { %855 = vmatprep.subr.bf16.mxu0 %v1076_v1 }
  0x73   :  { %856 = vmatpush3.bf16.msra.mxu0 %v923_v60 }
  0x75   :  { %802 = vmatmul.mubr.msk.bf16.gmra.mrb[16].mxu0 %vm131_vm2, %v907_v14 }
  0x76   :  { %857 = vmatprep.mubr.msk.bf16.mxu0 %vm1077_vm0, %v1076_v1 }
 0x128   :  { %v185_v25 = vpop.f32.mrb[0].mxu0 }
 0x129   :  { %v787_v26 = vpop.f32.mrb[1].mxu0  ;;  %v186_v28 = vadd.f32 %v666_v24, %v185_v25 }
 0x12a   :  { %v188_v27 = vpop.f32.mrb[2].mxu0 }
 0x12b   :  { %v189_v29 = vadd.f32 %v666_v24, %v188_v27  ;;  %v788_v30 = vpop.f32.mrb[3].mxu0 }
 0x12d   :  { %v224_v31 = vpack.c.bf16 %v189_v29, %v186_v28 }
 0x12f   :  { %822 = vmatmul.mubr.bf16.vlgmr.msra.gmra.mrb[0].mxu1 %v224_v31 }
 0x130   :  { %v193_v32 = vpop.f32.mrb[4].mxu0  ;;  %825 = vmatprep.mubr.msk.bf16.mxu1 %vm1077_vm0, %v1076_v1 }
 0x131   :  { %v791_v33 = vpop.f32.mrb[5].mxu0  ;;  %v194_v35 = vadd.f32 %v666_v24, %v193_v32 }
 0x132   :  { %v196_v34 = vpop.f32.mrb[6].mxu0 }
 0x133   :  { %v197_v36 = vadd.f32 %v666_v24, %v196_v34  ;;  %v792_v37 = vpop.f32.mrb[7].mxu0  ;;  %v573_v34 = vld [vmem:[#allocation2] sm:$0x1] }
 0x135   :  { %v225_v38 = vpack.c.bf16 %v197_v36, %v194_v35  ;;  %v1078_v35 = vmov 0   ;;  %v686_v36 = vld [vmem:[%s1327_s6] ss:$0 sm:$0xff] }
 0x136   :  { %902 = vset.pattern.permute.xlu0 %v1078_v35 }
 0x137   :  { %826 = vmatmul.mubr.bf16.gmra.mrb[4].mxu1 %v225_v38  ;;  %576 = vperm.xlu0 %902, %v573_v34  }
 0x138   :  { %v201_v39 = vpop.f32.mrb[8].mxu0  ;;  %829 = vmatprep.mubr.msk.bf16.mxu1 %vm1077_vm0, %v1076_v1 }
 0x139   :  { %v795_v40 = vpop.f32.mrb[9].mxu0  ;;  %v202_v42 = vadd.f32 %v666_v24, %v201_v39 }
 0x13a   :  { %v204_v41 = vpop.f32.mrb[10].mxu0 }
 0x13b   :  { %v205_v43 = vadd.f32 %v666_v24, %v204_v41  ;;  %v796_v44 = vpop.f32.mrb[11].mxu0 }
 0x13d   :  { %v226_v45 = vpack.c.bf16 %v205_v43, %v202_v42 }
 0x13f   :  { %830 = vmatmul.mubr.bf16.gmra.mrb[8].mxu1 %v226_v45 }
 0x140   :  { %v209_v46 = vpop.f32.mrb[12].mxu0  ;;  %833 = vmatprep.mubr.msk.bf16.mxu1 %vm1077_vm0, %v1076_v1 }
 0x141   :  { %v799_v47 = vpop.f32.mrb[13].mxu0  ;;  %v210_v49 = vadd.f32 %v666_v24, %v209_v46 }
 0x142   :  { %v212_v48 = vpop.f32.mrb[14].mxu0 }
 0x143   :  { %v213_v50 = vadd.f32 %v666_v24, %v212_v48  ;;  %v800_v51 = vpop.f32.mrb[15].mxu0 }
 0x145   :  { %v227_v52 = vpack.c.bf16 %v213_v50, %v210_v49 }
 0x147   :  { %834 = vmatmul.mubr.bf16.gmra.mrb[12].mxu1 %v227_v52 }
 0x148   :  { %v217_v53 = vpop.f32.mrb[16].mxu0  ;;  %837 = vmatprep.mubr.msk.bf16.mxu1 %vm1077_vm0, %v1076_v1 }
 0x149   :  { %v803_v54 = vpop.f32.mrb[17].mxu0  ;;  %v218_v56 = vadd.f32 %v666_v24, %v217_v53 }
 0x14a   :  { %v220_v55 = vpop.f32.mrb[18].mxu0 }
 0x14b   :  { %v221_v57 = vadd.f32 %v666_v24, %v220_v55  ;;  %v804_v58 = vpop.f32.mrb[19].mxu0 }
 0x14d   :  { %v228_v59 = vpack.c.bf16 %v221_v57, %v218_v56 }
 0x14f   :  { %838 = vmatmul.mubr.bf16.gmra.mrb[16].mxu1 %v228_v59 }
 0x150   :  { %887 = vmatprep.mubr.msk.bf16.mxu1 %vm1077_vm0, %v1076_v1 }
 0x202   :  { %v334_v62 = vpop.f32.mrb[0].mxu1 }
 0x203   :  { %v823_v63 = vpop.f32.mrb[1].mxu1  ;;  %v335_v2 = vadd.f32 %v677_v61, %v334_v62 }
 0x204   :  { %v337_v0 = vpop.f32.mrb[2].mxu1 }
 0x205   :  { %v338_v3 = vadd.f32 %v677_v61, %v337_v0  ;;  %v824_v4 = vpop.f32.mrb[3].mxu1 }
 0x207   :  { %v373_v5 = vpack.c.bf16 %v338_v3, %v335_v2 }
 0x209   :  { %858 = vmatmul.mubr.bf16.vlgmr.msra.gmra.mrb[20].mxu0 %v373_v5 }
 0x20a   :  { %v342_v6 = vpop.f32.mrb[4].mxu1  ;;  %861 = vmatprep.mubr.msk.bf16.mxu0 %vm1077_vm0, %v1076_v1 }
 0x20b   :  { %v827_v7 = vpop.f32.mrb[5].mxu1  ;;  %v343_v9 = vadd.f32 %v677_v61, %v342_v6 }
 0x20c   :  { %v345_v8 = vpop.f32.mrb[6].mxu1 }
 0x20d   :  { %v346_v10 = vadd.f32 %v677_v61, %v345_v8  ;;  %v828_v11 = vpop.f32.mrb[7].mxu1 }
 0x20f   :  { %v374_v12 = vpack.c.bf16 %v346_v10, %v343_v9  ;;  %v572_v9 = vld [vmem:[%s1328_s7] sm:$0x1] }
 0x211   :  { %862 = vmatmul.mubr.bf16.gmra.mrb[24].mxu0 %v374_v12 }
 0x212   :  { %v350_v13 = vpop.f32.mrb[8].mxu1  ;;  %865 = vmatprep.mubr.msk.bf16.mxu0 %vm1077_vm0, %v1076_v1 }
 0x213   :  { %v831_v14 = vpop.f32.mrb[9].mxu1  ;;  %v351_v16 = vadd.f32 %v677_v61, %v350_v13 }
 0x214   :  { %v353_v15 = vpop.f32.mrb[10].mxu1 }
 0x215   :  { %v354_v17 = vadd.f32 %v677_v61, %v353_v15  ;;  %v832_v18 = vpop.f32.mrb[11].mxu1 }
 0x217   :  { %v375_v19 = vpack.c.bf16 %v354_v17, %v351_v16 }
 0x219   :  { %866 = vmatmul.mubr.bf16.gmra.mrb[28].mxu0 %v375_v19 }
 0x21a   :  { %v358_v20 = vpop.f32.mrb[12].mxu1  ;;  %869 = vmatprep.mubr.msk.bf16.mxu0 %vm1077_vm0, %v1076_v1 }
 0x21b   :  { %v835_v21 = vpop.f32.mrb[13].mxu1  ;;  %v359_v23 = vadd.f32 %v677_v61, %v358_v20 }
 0x21c   :  { %v361_v22 = vpop.f32.mrb[14].mxu1 }
 0x21d   :  { %v362_v24 = vadd.f32 %v677_v61, %v361_v22  ;;  %v836_v25 = vpop.f32.mrb[15].mxu1 }
 0x21f   :  { %v376_v26 = vpack.c.bf16 %v362_v24, %v359_v23 }
 0x221   :  { %870 = vmatmul.mubr.bf16.gmra.mrb[32].mxu0 %v376_v26 }
 0x222   :  { %v366_v27 = vpop.f32.mrb[16].mxu1  ;;  %873 = vmatprep.mubr.msk.bf16.mxu0 %vm1077_vm0, %v1076_v1 }
 0x223   :  { %v839_v28 = vpop.f32.mrb[17].mxu1  ;;  %v367_v30 = vadd.f32 %v677_v61, %v366_v27 }
 0x224   :  { %v369_v29 = vpop.f32.mrb[18].mxu1 }
 0x225   :  { %v370_v31 = vadd.f32 %v677_v61, %v369_v29  ;;  %v840_v32 = vpop.f32.mrb[19].mxu1 }
 0x227   :  { %v377_v33 = vpack.c.bf16 %v370_v31, %v367_v30 }
 0x229   :  { %874 = vmatmul.mubr.bf16.gmra.mrb[36].mxu0 %v377_v33 }
 0x2dc   :  { %v483_v37 = vpop.f32.mrb[20].mxu0 }
 0x2dd   :  { %v859_v38 = vpop.f32.mrb[21].mxu0  ;;  %v484_v40 = vadd.f32 %v686_v36, %v483_v37 }
 0x2de   :  { %v486_v39 = vpop.f32.mrb[22].mxu0 }
 0x2df   :  { %v487_v41 = vadd.f32 %v686_v36, %v486_v39  ;;  %v860_v42 = vpop.f32.mrb[23].mxu0 }
 0x2e1   :  { %v522_v43 = vpack.c.bf16 %v487_v41, %v484_v40 }
 0x2e3   :  { %720 = vst [vmem:[#allocation11] sm:$0xff] %v522_v43   ;;  %878 = vmatpush3.bf16.xpose.msra.mxu1 %v522_v43 }
 0x2e4   :  { %v491_v44 = vpop.f32.mrb[24].mxu0  ;;  %879 = vmatprep.subr.bf16.mxu1 %v1076_v1 }
 0x2e5   :  { %v863_v45 = vpop.f32.mrb[25].mxu0  ;;  %v492_v47 = vadd.f32 %v686_v36, %v491_v44 }
 0x2e6   :  { %v494_v46 = vpop.f32.mrb[26].mxu0 }
 0x2e7   :  { %v495_v48 = vadd.f32 %v686_v36, %v494_v46  ;;  %v864_v49 = vpop.f32.mrb[27].mxu0 }
 0x2e9   :  { %v523_v50 = vpack.c.bf16 %v495_v48, %v492_v47 }
 0x2eb   :  { %741 = vst [vmem:[#allocation11 + $0x8] sm:$0xff] %v523_v50   ;;  %880 = vmatpush3.bf16.xpose.msra.mxu1 %v523_v50 }
 0x2ec   :  { %v499_v51 = vpop.f32.mrb[28].mxu0  ;;  %881 = vmatprep.subr.bf16.mxu1 %v1076_v1 }
 0x2ed   :  { %v867_v52 = vpop.f32.mrb[29].mxu0  ;;  %v500_v54 = vadd.f32 %v686_v36, %v499_v51 }
 0x2ee   :  { %v502_v53 = vpop.f32.mrb[30].mxu0 }
 0x2ef   :  { %v503_v55 = vadd.f32 %v686_v36, %v502_v53  ;;  %v868_v56 = vpop.f32.mrb[31].mxu0 }
 0x2f1   :  { %v524_v57 = vpack.c.bf16 %v503_v55, %v500_v54 }
 0x2f3   :  { %742 = vst [vmem:[#allocation11 + $0x10] sm:$0xff] %v524_v57   ;;  %882 = vmatpush3.bf16.xpose.msra.mxu1 %v524_v57 }
 0x2f4   :  { %v507_v58 = vpop.f32.mrb[32].mxu0  ;;  %883 = vmatprep.subr.bf16.mxu1 %v1076_v1 }
 0x2f5   :  { %v871_v59 = vpop.f32.mrb[33].mxu0  ;;  %v508_v61 = vadd.f32 %v686_v36, %v507_v58 }
 0x2f6   :  { %v510_v60 = vpop.f32.mrb[34].mxu0 }
 0x2f7   :  { %v511_v62 = vadd.f32 %v686_v36, %v510_v60  ;;  %v872_v63 = vpop.f32.mrb[35].mxu0 }
 0x2f9   :  { %v525_v0 = vpack.c.bf16 %v511_v62, %v508_v61 }
 0x2fb   :  { %743 = vst [vmem:[#allocation11 + $0x18] sm:$0xff] %v525_v0   ;;  %884 = vmatpush3.bf16.xpose.msra.mxu1 %v525_v0 }
 0x2fc   :  { %v515_v2 = vpop.f32.mrb[36].mxu0  ;;  %885 = vmatprep.subr.bf16.mxu1 %v1076_v1 }
 0x2fd   :  { %v875_v3 = vpop.f32.mrb[37].mxu0  ;;  %v516_v5 = vadd.f32 %v686_v36, %v515_v2 }
 0x2fe   :  { %v518_v4 = vpop.f32.mrb[38].mxu0 }
 0x2ff   :  { %v519_v6 = vadd.f32 %v686_v36, %v518_v4  ;;  %v876_v7 = vpop.f32.mrb[39].mxu0 }
 0x301   :  { %v526_v8 = vpack.c.bf16 %v519_v6, %v516_v5 }
 0x303   :  { %744 = vst [vmem:[#allocation11 + $0x20] sm:$0xff] %v526_v8   ;;  %886 = vmatpush3.bf16.xpose.msra.mxu1 %v526_v8 }
 0x30a   :  { %888 = vmatmul.mubr.bf16.vlgmr.msra.gmra.mrb[20].mxu1 %v572_v9 }
 0x30b   :  { %1027 = shalt.err (!%p1024_p8)
}
 0x30c   :  { %s1028_s29 = scalar_lea.hbm %s1330_s9, 640 }
 0x30d   :  { %p1029_p9 = scmp.ne.s32.totalorder %s1330_s9, %s1028_s29  ;;  %p1032_p10 = scmp.lt.u32.totalorder %s1028_s29, %s1330_s9 }
 0x30f   :  { %p1034_p11 = pnand %p1032_p10, %p1029_p9 }
 0x311   :  { %1037 = shalt.err (!%p1034_p11)
}
 0x312   :  { %644 = dma.vmem_to_hbm [thread:$0]  %s639_s25, 640, %s1330_s9, [#allocation5], %s1073_s1, %s1073_s1, %s1074_s18   ;;  %v579_v1 = vlaneseq  ;;  %v577_v12 = vpop.permute.xlu0 %576  ;;  %vm631_vm3 = vcmask 647168  }
 0x313   :  { %s1080_s14 = smov [#allocation12]  }
 0x314   :  { %v580_v10 = vshrl.u32 %v579_v1, 7  ;;  %s651_s15 = sshll.u32 %s1080_s14, 4  ;;  %s652_s15 = int_to_ptr.vmem [resolvable:$true] %s651_s15 }
 0x315   :  { %s1038_s9 = scalar_lea.vmem %s652_s15, 16  ;;  %s1042_s1 = scalar_lea.vmem %s652_s15, 32 }
 0x316   :  { %v581_v11 = vsub.s32 0, %v580_v10  ;;  %p1039_p12 = scmp.ne.s32.totalorder %s652_s15, %s1038_s9  ;;  %p1043_p13 = scmp.lt.s32.totalorder %s652_s15, %s652_s15 }
 0x317   :  { %p1044_p0 = scmp.lt.s32.totalorder %s1042_s1, %s1038_s9 }
 0x318   :  { %v582_v13 = vrot.slane %v577_v12, %v581_v11 }
 0x319   :  { %p1045_p1 = por %p1044_p0, %p1043_p13 }
 0x31b   :  { %p1046_p2 = pnand %p1045_p1, %p1039_p12 }
 0x3dd   :  { %v617_v14 = vpop.f32.mrb[20].mxu1 }
 0x3de   :  { %v618_v15 = vadd.f32 %v617_v14, %v582_v13  ;;  %v889_v16 = vpop.f32.mrb[21].mxu1 }
 0x3df   :  { %v620_v17 = vpop.f32.mrb[22].mxu1 }
 0x3e0   :  { %v705_v18 = vmul.f32 -1.442695, %v618_v15  ;;  %v890_v19 = vpop.f32.mrb[23].mxu1 }
 0x3e2   :  { %924 = vpow2.f32 %v705_v18 }
 0x3ec   :  { %v925_v20 = vpop.eup %924 }
 0x3ed   :  { %v626_v21 = vadd.f32 1.0, %v925_v20 }
 0x3ef   :  { %926 = vrcp.f32 %v626_v21 }
 0x3f9   :  { %v927_v22 = vpop.eup %926 }
 0x3fa   :  { %v629_v23 = vmax.f32 %v927_v22, 0.0 }
 0x3fc   :  { %v630_v24 = vmin.f32 %v629_v23, 1.0 }
 0x3fe   :  { %632 = vst.msk [vmem:[#allocation12] sm:$0x1] %vm631_vm3, %v630_v24 }
 0x3ff   :  { %1049 = shalt.err (!%p1046_p2)
}
 0x400   :  { %s1050_s2 = scalar_lea.hbm %s1331_s10, 16 }
 0x401   :  { %p1051_p3 = scmp.ne.s32.totalorder %s1331_s10, %s1050_s2  ;;  %p1054_p4 = scmp.lt.u32.totalorder %s1050_s2, %s1331_s10 }
 0x403   :  { %p1056_p5 = pnand %p1054_p4, %p1051_p3 }
 0x405   :  { %1059 = shalt.err (!%p1056_p5)
}
 0x406   :  { %654 = dma.vmem_to_hbm [thread:$0]  %s652_s15, 16, %s1331_s10, [#allocation13]  }
 0x407   :  { %1066 = dma.done.wait [#allocation5], 640  }
 0x408   :  { %1067 = vsyncadd [#allocation5], 4294966656 }
 0x409   :  { %1068 = dma.done.wait [#allocation13], 16  }
 0x40a   :  { %1069 = vsyncadd [#allocation13], 4294967280 }
 0x40b   :  { %661 = vsyncpa [#allocation4], 1 }
 0x40c   :  { %662 = vsyncpa [#allocation7], 1 }
 0x40d   :  { %663 = vsyncpa [#allocation10], 1 }
 0x40e   :  { %664 = vsyncpa [#allocation5], 1 }
 0x40f   :  { %665 = vsyncpa [#allocation13], 1 }

</bundles_post_ra>
